<compile_context>
chip_gen: v5e
topology: v5e:2x2
jax: 0.10.0
libtpu: 0.0.40
codegen_flags: <defaults>
</compile_context>

<pallas_src>
import math
import functools

import jax
import jax.numpy as jnp
from jax.experimental import pallas as pl
from jax.experimental.pallas import tpu as pltpu

_GELU_C = math.sqrt(2.0 / math.pi)


def _round_up(a, b):
    return ((a + b - 1) // b) * b


def _ceil_div(a, b):
    return (a + b - 1) // b


def _vmem_capacity_bytes():
    try:
        info = pltpu.get_tpu_info()
        cap = getattr(info, "vmem_capacity_bytes", None)
        if cap:
            return int(cap)
    except Exception:
        pass
    return 128 << 20  # v5e/v6e default


def _default_tiles(vmem_cap_bytes):
    """Generation-aware (tm, tf) defaults for the bf16 compute path."""
    kind = ""
    try:
        kind = jax.devices()[0].device_kind.lower()
    except Exception:
        pass
    if vmem_cap_bytes <= (64 << 20):
        # v7x-class: 64 MiB VMEM per TensorCore -> moderate tiles (~32 MiB).
        return 512, 256
    if "v5" in kind:
        # v5e: ridge ~240 flops/byte, single vst slot -> small tm, large tf.
        return 256, 1024
    # v6e (and other 128-MiB chips): cross the ~650 flops/byte ridge.
    return 1024, 512


def _ffn_kernel_acc_out(x_ref, w1_ref, w2_ref, o_ref):
    """f32 output: accumulate directly into the resident output block."""
    f = pl.program_id(1)

    @pl.when(f == 0)
    def _():
        o_ref[...] = jnp.zeros_like(o_ref)

    h = jnp.dot(x_ref[...], w1_ref[...], preferred_element_type=jnp.float32)
    # tanh-approx GELU exactly as in the PyTorch module, kept in f32.
    g = 0.5 * h * (1.0 + jnp.tanh(_GELU_C * (h + 0.044715 * h * h * h)))
    o_ref[...] += jnp.dot(g.astype(w2_ref.dtype), w2_ref[...],
                          preferred_element_type=jnp.float32)


def _ffn_kernel_scratch_acc(x_ref, w1_ref, w2_ref, o_ref, acc_ref):
    """Narrow (e.g. bf16) output: f32 scratch accumulator, cast at the end."""
    f = pl.program_id(1)

    @pl.when(f == 0)
    def _():
        acc_ref[...] = jnp.zeros_like(acc_ref)

    h = jnp.dot(x_ref[...], w1_ref[...], preferred_element_type=jnp.float32)
    g = 0.5 * h * (1.0 + jnp.tanh(_GELU_C * (h + 0.044715 * h * h * h)))
    acc_ref[...] += jnp.dot(g.astype(w2_ref.dtype), w2_ref[...],
                            preferred_element_type=jnp.float32)

    @pl.when(f == pl.num_programs(1) - 1)
    def _():
        o_ref[...] = acc_ref[...].astype(o_ref.dtype)


def complex_ffn(x, w1, w2, *, compute_dtype=jnp.bfloat16, tm=None, tf=None):
    """x: (..., H).  w1: (H, F).  w2: (F, H).  Returns x.shape / x.dtype."""
    orig_shape = x.shape
    out_dtype = x.dtype
    H = orig_shape[-1]
    F_ = w1.shape[1]
    assert w1.shape == (H, F_) and w2.shape == (F_, H)

    x2d = x.reshape(-1, H)
    M = x2d.shape[0]

    vmem_cap = _vmem_capacity_bytes()
    tm_d, tf_d = _default_tiles(vmem_cap)
    tm = tm_d if tm is None else tm
    tf = tf_d if tf is None else tf

    # ---- tile / padding derivation (minimise dead rows/cols) --------------
    Hp = _round_up(H, 128)                                  # lane-dense stores
    sublane = 16 if jnp.dtype(compute_dtype) == jnp.dtype(jnp.bfloat16) else 8
    n_i = max(_ceil_div(M, tm), 1)
    tm_eff = _round_up(_ceil_div(M, n_i), sublane)
    Mp = _round_up(M, tm_eff)
    n_f = max(_ceil_div(F_, tf), 1)
    tf_eff = _round_up(_ceil_div(F_, n_f), 128)
    Fp = _round_up(F_, tf_eff)

    if (Mp, Hp) != (M, H):
        x2d = jnp.pad(x2d, ((0, Mp - M), (0, Hp - H)))
    w1p = jnp.pad(w1, ((0, Hp - H), (0, Fp - F_))) if (Hp, Fp) != (H, F_) else w1
    w2p = jnp.pad(w2, ((0, Fp - F_), (0, Hp - H))) if (Fp, Hp) != (F_, H) else w2

    # Cast operands to the MXU compute dtype (padding zeros stay zeros;
    # GELU(0)=0, so padded rows/cols contribute exactly nothing).
    x2d = x2d.astype(compute_dtype)
    w1p = w1p.astype(compute_dtype)
    w2p = w2p.astype(compute_dtype)

    grid = (Mp // tm_eff, Fp // tf_eff)

    csz = jnp.dtype(compute_dtype).itemsize
    out_is_f32 = jnp.dtype(out_dtype) == jnp.dtype(jnp.float32)
    out_pad_dtype = jnp.float32 if out_is_f32 else out_dtype
    osz = jnp.dtype(out_pad_dtype).itemsize

    # ---- VMEM budget: double-buffered input/output tiles (+ acc scratch) ---
    footprint = (2 * tm_eff * Hp * csz          # X tiles
                 + 2 * Hp * tf_eff * csz        # W1 tiles
                 + 2 * tf_eff * Hp * csz        # W2 tiles
                 + 2 * tm_eff * Hp * osz)       # output tiles
    if not out_is_f32:
        footprint += tm_eff * Hp * 4            # f32 accumulator scratch
    vmem_limit = int(min(max(footprint + (8 << 20), 32 << 20),
                         int(vmem_cap * 0.85)))

    # W1/W2 are re-streamed once per row tile; count that honestly.
    cost = pl.CostEstimate(
        flops=4 * M * H * F_,
        transcendentals=M * F_,
        bytes_accessed=(Mp * Hp * csz
                        + grid[0] * (Hp * Fp + Fp * Hp) * csz
                        + Mp * Hp * osz),
    )

    in_specs = [
        pl.BlockSpec((tm_eff, Hp), lambda i, f: (i, 0)),    # X row tile
        pl.BlockSpec((Hp, tf_eff), lambda i, f: (0, f)),    # W1 column slice
        pl.BlockSpec((tf_eff, Hp), lambda i, f: (f, 0)),    # W2 row slice
    ]
    out_spec = pl.BlockSpec((tm_eff, Hp), lambda i, f: (i, 0))

    if out_is_f32:
        kernel = _ffn_kernel_acc_out
        scratch = []
    else:
        kernel = _ffn_kernel_scratch_acc
        scratch = [pltpu.VMEM((tm_eff, Hp), jnp.float32)]

    out = pl.pallas_call(
        kernel,
        out_shape=jax.ShapeDtypeStruct((Mp, Hp), out_pad_dtype),
        grid_spec=pltpu.PrefetchScalarGridSpec(
            num_scalar_prefetch=0,
            grid=grid,
            in_specs=in_specs,
            out_specs=out_spec,
            scratch_shapes=scratch,
        ),
        compiler_params=pltpu.CompilerParams(
            dimension_semantics=("parallel", "arbitrary"),
            vmem_limit_bytes=vmem_limit,
        ),
        cost_estimate=cost,
    )(x2d, w1p, w2p)

    out = out[:M, :H].astype(out_dtype)
    return out.reshape(orig_shape)


def reference_ffn(x, w1, w2):
    h = x @ w1
    g = 0.5 * h * (1.0 + jnp.tanh(_GELU_C * (h + 0.044715 * jnp.power(h, 3))))
    return g @ w2


if __name__ == "__main__":
    key = jax.random.PRNGKey(0)
    batch, seq, hidden, ffn = 2, 8, 32, 64

    k_x, k_w1, k_w2 = jax.random.split(key, 3)
    # Deterministic param init mirroring the module's __init__:
    #   W1 ~ randn(hidden, ffn) / sqrt(hidden), W2 ~ randn(ffn, hidden) / sqrt(ffn)
    w1 = jax.random.normal(k_w1, (hidden, ffn), jnp.float32) / math.sqrt(hidden)
    w2 = jax.random.normal(k_w2, (ffn, hidden), jnp.float32) / math.sqrt(ffn)
    x = jax.random.normal(k_x, (batch, seq, hidden), jnp.float32)

    y_ref = reference_ffn(x, w1, w2)

    # Exact-numerics path: f32 operands on the MXU, tight tolerance.
    ffn_f32 = jax.jit(functools.partial(complex_ffn, compute_dtype=jnp.float32))
    y32 = jax.block_until_ready(ffn_f32(x, w1, w2))
    assert y32.shape == x.shape
    assert jnp.allclose(y32, y_ref, atol=1e-5, rtol=1e-5), "f32 path mismatch"

    # Default fast path: bf16 operands, f32 accumulation / GELU.
    ffn_bf16 = jax.jit(complex_ffn)
    y16 = jax.block_until_ready(ffn_bf16(x, w1, w2))
    assert y16.shape == x.shape and y16.dtype == x.dtype
    assert jnp.allclose(y16, y_ref, atol=4e-2, rtol=4e-2), "bf16 path mismatch"

    print("KERNEL_OK")
</pallas_src>

<mosaic_0001>
module attributes {stable_mosaic.version = 11 : i64} {
  func.func @_ffn_kernel_acc_out(%arg0: i32, %arg1: i32, %arg2: memref<16x128xf32, #tpu.memory_space<vmem>>, %arg3: memref<128x128xf32, #tpu.memory_space<vmem>>, %arg4: memref<128x128xf32, #tpu.memory_space<vmem>>, %arg5: memref<16x128xf32, #tpu.memory_space<vmem>>) attributes {dimension_semantics = [#tpu.dimension_semantics<parallel>, #tpu.dimension_semantics<arbitrary>], iteration_bounds = array<i64: 1, 1>, scalar_prefetch = 0 : i64, scratch_operands = 0 : i64, tpu.core_type = #tpu.core_type<tc>, window_params = [{transform_indices = @transform_0, window_bounds = array<i64: 16, 128>}, {transform_indices = @transform_1, window_bounds = array<i64: 128, 128>}, {transform_indices = @transform_2, window_bounds = array<i64: 128, 128>}, {transform_indices = @transform_3, window_bounds = array<i64: 16, 128>}]} {
    %c0_i32 = arith.constant 0 : i32
    %0 = arith.cmpi eq, %arg1, %c0_i32 : i32
    %1 = arith.extui %0 : i1 to i32
    %c0_i32_0 = arith.constant 0 : i32
    %2 = arith.cmpi ne, %1, %c0_i32_0 : i32
    scf.if %2 {
      %cst_15 = arith.constant 0.000000e+00 : f32
      %24 = vector.broadcast %cst_15 : f32 to vector<16x128xf32>
      %c0_16 = arith.constant 0 : index
      %c0_17 = arith.constant 0 : index
      %25 = vector.load %arg5[%c0_16, %c0_17] : memref<16x128xf32, #tpu.memory_space<vmem>>, vector<16x128xf32>
      tpu.vector_store %arg5[%c0_16, %c0_17], %24 {strides = array<i32>} : memref<16x128xf32, #tpu.memory_space<vmem>>, vector<16x128xf32>,
    } else {
    }
    %c0 = arith.constant 0 : index
    %c0_1 = arith.constant 0 : index
    %3 = vector.load %arg2[%c0, %c0_1] : memref<16x128xf32, #tpu.memory_space<vmem>>, vector<16x128xf32>
    %c0_2 = arith.constant 0 : index
    %c0_3 = arith.constant 0 : index
    %4 = vector.load %arg3[%c0_2, %c0_3] : memref<128x128xf32, #tpu.memory_space<vmem>>, vector<128x128xf32>
    %cst = arith.constant dense<0.000000e+00> : vector<16x128xf32>
    %5 = tpu.matmul %3, %4, %cst {dimension_numbers = #tpu.dot_dimension_numbers<[1], [0], [0], [1], [0, 0, 1, 1], [], []>} : vector<16x128xf32>, vector<128x128xf32>, vector<16x128xf32> -> vector<16x128xf32>
    %cst_4 = arith.constant 5.000000e-01 : f32
    %6 = vector.broadcast %cst_4 : f32 to vector<16x128xf32>
    %7 = arith.mulf %6, %5 : vector<16x128xf32>
    %cst_5 = arith.constant 4.471500e-02 : f32
    %8 = vector.broadcast %cst_5 : f32 to vector<16x128xf32>
    %9 = arith.mulf %8, %5 : vector<16x128xf32>
    %10 = arith.mulf %9, %5 : vector<16x128xf32>
    %11 = arith.mulf %10, %5 : vector<16x128xf32>
    %12 = arith.addf %5, %11 : vector<16x128xf32>
    %cst_6 = arith.constant 0.797884583 : f32
    %13 = vector.broadcast %cst_6 : f32 to vector<16x128xf32>
    %14 = arith.mulf %13, %12 : vector<16x128xf32>
    %15 = math.tanh %14 : vector<16x128xf32>
    %cst_7 = arith.constant 1.000000e+00 : f32
    %16 = vector.broadcast %cst_7 : f32 to vector<16x128xf32>
    %17 = arith.addf %16, %15 : vector<16x128xf32>
    %18 = arith.mulf %7, %17 : vector<16x128xf32>
    %c0_8 = arith.constant 0 : index
    %c0_9 = arith.constant 0 : index
    %19 = vector.load %arg5[%c0_8, %c0_9] : memref<16x128xf32, #tpu.memory_space<vmem>>, vector<16x128xf32>
    %c0_10 = arith.constant 0 : index
    %c0_11 = arith.constant 0 : index
    %20 = vector.load %arg4[%c0_10, %c0_11] : memref<128x128xf32, #tpu.memory_space<vmem>>, vector<128x128xf32>
    %cst_12 = arith.constant dense<0.000000e+00> : vector<16x128xf32>
    %21 = tpu.matmul %18, %20, %cst_12 {dimension_numbers = #tpu.dot_dimension_numbers<[1], [0], [0], [1], [0, 0, 1, 1], [], []>} : vector<16x128xf32>, vector<128x128xf32>, vector<16x128xf32> -> vector<16x128xf32>
    %22 = arith.addf %19, %21 : vector<16x128xf32>
    %c0_13 = arith.constant 0 : index
    %c0_14 = arith.constant 0 : index
    %23 = vector.load %arg5[%c0_13, %c0_14] : memref<16x128xf32, #tpu.memory_space<vmem>>, vector<16x128xf32>
    tpu.vector_store %arg5[%c0_13, %c0_14], %22 {strides = array<i32>} : memref<16x128xf32, #tpu.memory_space<vmem>>, vector<16x128xf32>,
    return
  }
  func.func @transform_0(%arg0: i32, %arg1: i32) -> (i32, i32) {
    %c0_i32 = arith.constant 0 : i32
    %c0_i32_0 = arith.constant 0 : i32
    return %arg0, %c0_i32 : i32, i32
  }
  func.func @transform_1(%arg0: i32, %arg1: i32) -> (i32, i32) {
    %c0_i32 = arith.constant 0 : i32
    %c0_i32_0 = arith.constant 0 : i32
    return %c0_i32, %arg1 : i32, i32
  }
  func.func @transform_2(%arg0: i32, %arg1: i32) -> (i32, i32) {
    %c0_i32 = arith.constant 0 : i32
    %c0_i32_0 = arith.constant 0 : i32
    return %arg1, %c0_i32 : i32, i32
  }
  func.func @transform_3(%arg0: i32, %arg1: i32) -> (i32, i32) {
    %c0_i32 = arith.constant 0 : i32
    %c0_i32_0 = arith.constant 0 : i32
    return %arg0, %c0_i32 : i32, i32
  }
}

</mosaic_0001>

<bundles_post_ra>
// kernel: complex_ffn.1
= control target key start
LH: loop header
LB: loop body
LE: loop exit
PB: predicated region body
PF: predicated region fallthrough
CT: control target
= control target key end

     0   :  { %s293_s1 = inlined_call_operand.vmem [shape: f32[128,128], index: 1, kind: input, shape index: {}]   ;;  %s294_s2 = inlined_call_operand.vmem [shape: f32[128,128], index: 2, kind: input, shape index: {}]   ;;  %s295_s0 = inlined_call_operand.vmem [shape: f32[16,128], index: 0, kind: input, shape index: {}]   ;;  %s296_s3 = inlined_call_operand.vmem [shape: f32[16,128], index: 3, kind: output, shape index: {}]  }
   0x1   :  { %v37_v0 = vld [vmem:[%s293_s1 + $0x78] sm:$0xff]  ;;  %v36_v1 = vld [vmem:[%s293_s1 + $0x70] sm:$0xff]  ;;  %v35_v2 = vld [vmem:[%s293_s1 + $0x68] sm:$0xff] }
   0x2   :  { %38 = vmatpush.msra.mxu0 %v37_v0  ;;  %128 = vmatpush.msra.mxu2 %v37_v0  ;;  %v34_v3 = vld [vmem:[%s293_s1 + $0x60] sm:$0xff]  ;;  %v33_v4 = vld [vmem:[%s293_s1 + $0x58] sm:$0xff]  ;;  %v95_v6 = vld [vmem:[%s294_s2 + $0x70] sm:$0xff] }
   0x3   :  { %v96_v5 = vld [vmem:[%s294_s2 + $0x78] sm:$0xff]  ;;  %v32_v7 = vld [vmem:[%s293_s1 + $0x50] sm:$0xff]  ;;  %v94_v8 = vld [vmem:[%s294_s2 + $0x68] sm:$0xff] }
   0x4   :  { %39 = vmatpush.msra.mxu0 %v36_v1  ;;  %129 = vmatpush.msra.mxu2 %v36_v1  ;;  %v31_v9 = vld [vmem:[%s293_s1 + $0x48] sm:$0xff]  ;;  %v93_v10 = vld [vmem:[%s294_s2 + $0x60] sm:$0xff]  ;;  %v92_v12 = vld [vmem:[%s294_s2 + $0x58] sm:$0xff] }
   0x5   :  { %97 = vmatpush.msra.mxu1 %v96_v5  ;;  %144 = vmatpush.msra.mxu3 %v96_v5  ;;  %v30_v11 = vld [vmem:[%s293_s1 + $0x40] sm:$0xff]  ;;  %v29_v13 = vld [vmem:[%s293_s1 + $0x38] sm:$0xff]  ;;  %v28_v14 = vld [vmem:[%s293_s1 + $0x30] sm:$0xff] }
   0x6   :  { %40 = vmatpush.msra.mxu0 %v35_v2  ;;  %130 = vmatpush.msra.mxu2 %v35_v2  ;;  %v27_v15 = vld [vmem:[%s293_s1 + $0x28] sm:$0xff]  ;;  %v26_v16 = vld [vmem:[%s293_s1 + $0x20] sm:$0xff]  ;;  %v25_v17 = vld [vmem:[%s293_s1 + $0x18] sm:$0xff] }
   0x7   :  { %98 = vmatpush.msra.mxu1 %v95_v6  ;;  %145 = vmatpush.msra.mxu3 %v95_v6  ;;  %v24_v18 = vld [vmem:[%s293_s1 + $0x10] sm:$0xff]  ;;  %v23_v19 = vld [vmem:[%s293_s1 + $0x8] sm:$0xff]  ;;  %v22_v20 = vld [vmem:[%s293_s1] sm:$0xff] }
   0x8   :  { %41 = vmatpush.msra.mxu0 %v34_v3  ;;  %131 = vmatpush.msra.mxu2 %v34_v3  ;;  %v20_v21 = vld [vmem:[%s295_s0] sm:$0xff]  ;;  %v21_v22 = vld [vmem:[%s295_s0 + $0x8] sm:$0xff]  ;;  %v91_v23 = vld [vmem:[%s294_s2 + $0x50] sm:$0xff] }
   0x9   :  { %99 = vmatpush.msra.mxu1 %v94_v8  ;;  %146 = vmatpush.msra.mxu3 %v94_v8  ;;  %v90_v24 = vld [vmem:[%s294_s2 + $0x48] sm:$0xff]  ;;  %v89_v25 = vld [vmem:[%s294_s2 + $0x40] sm:$0xff]  ;;  %v88_v26 = vld [vmem:[%s294_s2 + $0x38] sm:$0xff] }
   0xa   :  { %42 = vmatpush.msra.mxu0 %v33_v4  ;;  %132 = vmatpush.msra.mxu2 %v33_v4  ;;  %v87_v27 = vld [vmem:[%s294_s2 + $0x30] sm:$0xff]  ;;  %v86_v28 = vld [vmem:[%s294_s2 + $0x28] sm:$0xff]  ;;  %v85_v29 = vld [vmem:[%s294_s2 + $0x20] sm:$0xff] }
   0xb   :  { %100 = vmatpush.msra.mxu1 %v93_v10  ;;  %147 = vmatpush.msra.mxu3 %v93_v10  ;;  %v84_v30 = vld [vmem:[%s294_s2 + $0x18] sm:$0xff]  ;;  %v83_v31 = vld [vmem:[%s294_s2 + $0x10] sm:$0xff]  ;;  %v82_v32 = vld [vmem:[%s294_s2 + $0x8] sm:$0xff] }
   0xc   :  { %43 = vmatpush.msra.mxu0 %v32_v7  ;;  %133 = vmatpush.msra.mxu2 %v32_v7  ;;  %v81_v33 = vld [vmem:[%s294_s2] sm:$0xff] }
   0xd   :  { %101 = vmatpush.msra.mxu1 %v92_v12  ;;  %148 = vmatpush.msra.mxu3 %v92_v12 }
   0xe   :  { %44 = vmatpush.msra.mxu0 %v31_v9  ;;  %134 = vmatpush.msra.mxu2 %v31_v9 }
   0xf   :  { %102 = vmatpush.msra.mxu1 %v91_v23  ;;  %149 = vmatpush.msra.mxu3 %v91_v23 }
  0x10   :  { %45 = vmatpush.msra.mxu0 %v30_v11  ;;  %135 = vmatpush.msra.mxu2 %v30_v11 }
  0x11   :  { %103 = vmatpush.msra.mxu1 %v90_v24  ;;  %150 = vmatpush.msra.mxu3 %v90_v24 }
  0x12   :  { %46 = vmatpush.msra.mxu0 %v29_v13  ;;  %136 = vmatpush.msra.mxu2 %v29_v13 }
  0x13   :  { %104 = vmatpush.msra.mxu1 %v89_v25  ;;  %151 = vmatpush.msra.mxu3 %v89_v25 }
  0x14   :  { %47 = vmatpush.msra.mxu0 %v28_v14  ;;  %137 = vmatpush.msra.mxu2 %v28_v14 }
  0x15   :  { %105 = vmatpush.msra.mxu1 %v88_v26  ;;  %152 = vmatpush.msra.mxu3 %v88_v26 }
  0x16   :  { %48 = vmatpush.msra.mxu0 %v27_v15  ;;  %138 = vmatpush.msra.mxu2 %v27_v15 }
  0x17   :  { %106 = vmatpush.msra.mxu1 %v87_v27  ;;  %153 = vmatpush.msra.mxu3 %v87_v27 }
  0x18   :  { %49 = vmatpush.msra.mxu0 %v26_v16  ;;  %139 = vmatpush.msra.mxu2 %v26_v16 }
  0x19   :  { %107 = vmatpush.msra.mxu1 %v86_v28  ;;  %154 = vmatpush.msra.mxu3 %v86_v28 }
  0x1a   :  { %50 = vmatpush.msra.mxu0 %v25_v17  ;;  %140 = vmatpush.msra.mxu2 %v25_v17 }
  0x1b   :  { %108 = vmatpush.msra.mxu1 %v85_v29  ;;  %155 = vmatpush.msra.mxu3 %v85_v29 }
  0x1c   :  { %51 = vmatpush.msra.mxu0 %v24_v18  ;;  %141 = vmatpush.msra.mxu2 %v24_v18 }
  0x1d   :  { %109 = vmatpush.msra.mxu1 %v84_v30  ;;  %156 = vmatpush.msra.mxu3 %v84_v30 }
  0x1e   :  { %52 = vmatpush.msra.mxu0 %v23_v19  ;;  %142 = vmatpush.msra.mxu2 %v23_v19 }
  0x1f   :  { %110 = vmatpush.msra.mxu1 %v83_v31  ;;  %157 = vmatpush.msra.mxu3 %v83_v31 }
  0x20   :  { %53 = vmatpush.msra.mxu0 %v22_v20  ;;  %143 = vmatpush.msra.mxu2 %v22_v20 }
  0x21   :  { %54 = vmatmul.f32.vlgmr.msra.gmra.mxu0 %v20_v21  ;;  %57 = vmatmul.f32.vlgmr.msra.gmra.mxu2 %v21_v22 }
  0x22   :  { %111 = vmatpush.msra.mxu1 %v82_v32  ;;  %158 = vmatpush.msra.mxu3 %v82_v32 }
  0x24   :  { %112 = vmatpush.msra.mxu1 %v81_v33  ;;  %159 = vmatpush.msra.mxu3 %v81_v33 }
  0x9e   :  { %v55_v34 = vpop.f32.mrf.mxu0 }
  0x9f   :  { %v63_v35 = vmul.f32 0.044715, %v55_v34  ;;  %v61_v47 = vmul.f32 0.5, %v55_v34 }
  0xa1   :  { %v65_v36 = vmul.f32 %v63_v35, %v55_v34 }
  0xa3   :  { %v67_v37 = vmul.f32 %v65_v36, %v55_v34 }
  0xa4   :  { %v58_v38 = vpop.f32.mrf.mxu2 }
  0xa5   :  { %v69_v39 = vadd.f32 %v67_v37, %v55_v34  ;;  %v64_v40 = vmul.f32 0.044715, %v58_v38  ;;  %v62_v51 = vmul.f32 0.5, %v58_v38 }
  0xa7   :  { %v66_v41 = vmul.f32 %v64_v40, %v58_v38  ;;  %v71_v42 = vmul.f32 0.7978846, %v69_v39 }
  0xa9   :  { %v68_v43 = vmul.f32 %v66_v41, %v58_v38  ;;  %161 = vtanh.f32 %v71_v42 }
  0xab   :  { %v70_v44 = vadd.f32 %v68_v43, %v58_v38 }
  0xad   :  { %v72_v45 = vmul.f32 0.7978846, %v70_v44 }
  0xaf   :  { %v162_v46 = vpop.eup %161  ;;  %163 = vtanh.f32 %v72_v45 }
  0xb0   :  { %v75_v48 = vadd.f32 1.0, %v162_v46 }
  0xb2   :  { %v77_v49 = vmul.f32 %v75_v48, %v61_v47 }
  0xb4   :  { %113 = vmatmul.f32.vlgmr.msra.gmra.mxu1 %v77_v49 }
  0xb5   :  { %v164_v50 = vpop.eup %163 }
  0xb6   :  { %v76_v52 = vadd.f32 1.0, %v164_v50 }
  0xb8   :  { %v78_v53 = vmul.f32 %v76_v52, %v62_v51 }
  0xba   :  { %116 = vmatmul.f32.vlgmr.msra.gmra.mxu3 %v78_v53 }
 0x131   :  { %v114_v54 = vpop.f32.mrf.mxu1 }
 0x132   :  { %122 = vst [vmem:[%s296_s3] sm:$0xff] %v114_v54 }
 0x13d   :  { %v117_v55 = vpop.f32.mrf.mxu3 }
 0x13e   :  { %123 = vst [vmem:[%s296_s3 + $0x8] sm:$0xff] %v117_v55 }

</bundles_post_ra>
